<compile_context>
chip_gen: v7x
topology: tpu7x:2x2x1
jax: 0.10.0
libtpu: 0.0.40
codegen_flags: <defaults>
</compile_context>

<pallas_src>
import functools

import jax
import jax.numpy as jnp
from jax.experimental import pallas as pl
from jax.experimental.pallas import tpu as pltpu


def _round_up(x, m):
    return (x + m - 1) // m * m


def _down_wt_kernel(xt_ref, w_ref, shift_ref, o_ref):
    # xt:    (4C, tn)      corner-interleaved input columns of one image tile
    # w:     (out_ch, 4C)  Haar + BN folded 1x1-conv weight
    # shift: (out_ch, 1)   folded conv-bias + BN shift
    # o:     (out_ch, tn)
    y = jnp.dot(w_ref[...], xt_ref[...], preferred_element_type=jnp.float32)
    y = y + shift_ref[...]
    o_ref[...] = jnp.maximum(y, 0.0).astype(o_ref.dtype)


@functools.partial(jax.jit, static_argnames=("tn", "compute_dtype"))
def down_wt_forward(x, conv_w, conv_b, bn_gamma, bn_beta, bn_mean, bn_var,
                    *, tn=None, compute_dtype=jnp.float32):
    """x: (B, C, H, W) float32 NCHW. Returns (B, out_ch, H//2, W//2) NCHW (float32)."""
    B, C, H, W = x.shape
    out_ch = conv_w.shape[0]
    Ho, Wo = H // 2, W // 2
    HoWo = Ho * Wo
    K = 4 * C

    # ---- Single layout repack: NCHW -> (B, 4C, Ho*Wo), 4C rows ordered [a,b,c,d] ----
    # a,b,c,d are the four corners of each 2x2 block (row-major within the block).
    x6 = x.reshape(B, C, Ho, 2, Wo, 2)
    xt = jnp.transpose(x6, (0, 3, 5, 1, 2, 4)).reshape(B, K, HoWo)
    xt = xt.astype(compute_dtype)

    # ---- Fold the Haar analysis into the 1x1-conv weight ----
    # y = ll@Wll + hl@Whl + lh@Wlh + hh@Whh with
    #   ll=(a+b+c+d)/2, hl=(a+b-c-d)/2, lh=(a-b+c-d)/2, hh=(a-b-c+d)/2
    # collapses to one matmul against the corner-ordered weight below.
    w2 = conv_w.reshape(out_ch, 4, C).astype(jnp.float32)
    wll, whl, wlh, whh = w2[:, 0], w2[:, 1], w2[:, 2], w2[:, 3]
    wa = 0.5 * (wll + whl + wlh + whh)
    wb = 0.5 * (wll + whl - wlh - whh)
    wc = 0.5 * (wll - whl + wlh - whh)
    wd = 0.5 * (wll - whl - wlh + whh)
    w_folded = jnp.concatenate([wa, wb, wc, wd], axis=1)            # (out_ch, 4C)

    # ---- Fold eval-mode BatchNorm (running stats) into weight + shift ----
    # TODO(synk): training-mode BatchNorm (batch statistics) is not implemented.
    eps = 1e-5
    scale = bn_gamma / jnp.sqrt(bn_var + eps)                       # (out_ch,)
    w_folded = (w_folded * scale[:, None]).astype(compute_dtype)
    shift = ((conv_b - bn_mean) * scale + bn_beta).astype(jnp.float32)
    shift = shift.reshape(out_ch, 1)

    # ---- Column tile selection (lane dim = Ho*Wo) ----
    isz = jnp.dtype(compute_dtype).itemsize
    if tn is None:
        per_col = 2 * (K * isz + out_ch * 4)   # double-buffered input + f32 output
        tn_budget = max(128, min(4096, (12 * 2**20 // per_col) // 128 * 128))
        # keep roughly >= 8 total grid steps so v7x's two TensorCores both get work
        tn_steps = max(128, _round_up(pl.cdiv(HoWo, max(1, pl.cdiv(8, B))), 128))
        tn = min(tn_budget, tn_steps)
    if tn >= HoWo:
        tn = HoWo                      # whole image in one column block, no padding
    else:
        tn = max(128, tn // 128 * 128)
    n_cols = _round_up(HoWo, tn)
    if n_cols != HoWo:
        xt = jnp.pad(xt, ((0, 0), (0, 0), (0, n_cols - HoWo)))

    grid = (B, n_cols // tn)

    vmem_est = (2 * (K * tn * isz + out_ch * tn * 4)
                + 2 * K * out_ch * isz + out_ch * 4 + (1 << 20))
    vmem_limit = int(min(48 * 2**20, max(vmem_est, 16 * 2**20)))

    out = pl.pallas_call(
        _down_wt_kernel,
        out_shape=jax.ShapeDtypeStruct((B, out_ch, n_cols), jnp.float32),
        grid_spec=pltpu.PrefetchScalarGridSpec(
            num_scalar_prefetch=0,
            grid=grid,
            in_specs=[
                pl.BlockSpec((None, K, tn), lambda b, j: (b, 0, j)),
                pl.BlockSpec((out_ch, K), lambda b, j: (0, 0)),
                pl.BlockSpec((out_ch, 1), lambda b, j: (0, 0)),
            ],
            out_specs=pl.BlockSpec((None, out_ch, tn), lambda b, j: (b, 0, j)),
        ),
        compiler_params=pltpu.CompilerParams(
            dimension_semantics=("parallel", "parallel"),
            vmem_limit_bytes=vmem_limit),
    )(xt, w_folded, shift)

    if n_cols != HoWo:
        out = out[:, :, :HoWo]
    # (B, out_ch, Ho*Wo) is already flattened NCHW -> just reshape, no transpose.
    return out.reshape(B, out_ch, Ho, Wo)


def _reference(x, conv_w, conv_b, bn_gamma, bn_beta, bn_mean, bn_var):
    """Pure-JAX reference of the same forward pass (for self-check)."""
    a = x[:, :, 0::2, 0::2]
    b = x[:, :, 0::2, 1::2]
    c = x[:, :, 1::2, 0::2]
    d = x[:, :, 1::2, 1::2]
    ll = (a + b + c + d) * 0.5
    hl = (a + b - c - d) * 0.5
    lh = (a - b + c - d) * 0.5
    hh = (a - b - c + d) * 0.5
    cat = jnp.concatenate([ll, hl, lh, hh], axis=1)        # (B, 4C, Ho, Wo)
    out_ch = conv_w.shape[0]
    w2 = conv_w.reshape(out_ch, -1)
    y = jnp.einsum("oc,bchw->bohw", w2, cat) + conv_b[None, :, None, None]
    eps = 1e-5
    y = (y - bn_mean[None, :, None, None]) / jnp.sqrt(bn_var + eps)[None, :, None, None]
    y = y * bn_gamma[None, :, None, None] + bn_beta[None, :, None, None]
    return jnp.maximum(y, 0.0)


if __name__ == "__main__":
    B, in_ch, H, W = 2, 4, 16, 16
    out_ch = 8

    key = jax.random.PRNGKey(0)
    kx, kw, kb, kg, kbe, km, kv = jax.random.split(key, 7)

    x = jax.random.normal(kx, (B, in_ch, H, W), dtype=jnp.float32)

    # Deterministic synthetic parameters (shapes follow the module's __init__).
    conv_w = jax.random.normal(kw, (out_ch, in_ch * 4, 1, 1), jnp.float32) * 0.1
    conv_b = jax.random.normal(kb, (out_ch,), jnp.float32) * 0.1
    bn_gamma = 1.0 + 0.1 * jax.random.normal(kg, (out_ch,), jnp.float32)
    bn_beta = 0.1 * jax.random.normal(kbe, (out_ch,), jnp.float32)
    bn_mean = 0.1 * jax.random.normal(km, (out_ch,), jnp.float32)
    bn_var = jnp.abs(jax.random.normal(kv, (out_ch,), jnp.float32)) + 0.5

    ref = _reference(x, conv_w, conv_b, bn_gamma, bn_beta, bn_mean, bn_var)

    # f32 path (exact check).
    out = down_wt_forward(x, conv_w, conv_b, bn_gamma, bn_beta, bn_mean, bn_var)
    out = jax.block_until_ready(out)
    assert out.shape == (B, out_ch, H // 2, W // 2), out.shape
    assert jnp.allclose(out, ref, atol=1e-4, rtol=1e-4), float(
        jnp.max(jnp.abs(out - ref)))

    # bf16-operand path (recommended on v6e/v7x: halves slab DMA, native MXU dtype);
    # f32 accumulation, loose tolerance smoke-check against the f32 reference.
    out_bf16 = down_wt_forward(x, conv_w, conv_b, bn_gamma, bn_beta, bn_mean, bn_var,
                               compute_dtype=jnp.bfloat16)
    out_bf16 = jax.block_until_ready(out_bf16)
    max_err = float(jnp.max(jnp.abs(out_bf16 - ref)))
    assert max_err < 0.25 * (float(jnp.max(jnp.abs(ref))) + 1e-6), max_err

    print("KERNEL_OK")
</pallas_src>

<mosaic_0001>
module attributes {stable_mosaic.version = 11 : i64} {
  func.func @_down_wt_kernel(%arg0: i32, %arg1: i32, %arg2: memref<1x16x64xf32, #tpu.memory_space<vmem>>, %arg3: memref<8x16xf32, #tpu.memory_space<vmem>>, %arg4: memref<8x1xf32, #tpu.memory_space<vmem>>, %arg5: memref<1x8x64xf32, #tpu.memory_space<vmem>>) attributes {dimension_semantics = [#tpu.dimension_semantics<parallel>, #tpu.dimension_semantics<parallel>], iteration_bounds = array<i64: 2, 1>, scalar_prefetch = 0 : i64, scratch_operands = 0 : i64, tpu.core_type = #tpu.core_type<tc>, window_params = [{transform_indices = @transform_0, window_bounds = array<i64: 1, 16, 64>}, {pipeline_mode = #tpu.pipeline_mode<synchronous>, transform_indices = @transform_1, window_bounds = array<i64: 8, 16>}, {pipeline_mode = #tpu.pipeline_mode<synchronous>, transform_indices = @transform_2, window_bounds = array<i64: 8, 1>}, {transform_indices = @transform_3, window_bounds = array<i64: 1, 8, 64>}]} {
    %c0 = arith.constant 0 : index
    %c0_0 = arith.constant 0 : index
    %0 = vector.load %arg3[%c0, %c0_0] : memref<8x16xf32, #tpu.memory_space<vmem>>, vector<8x16xf32>
    %c0_1 = arith.constant 0 : index
    %c0_2 = arith.constant 0 : index
    %c0_3 = arith.constant 0 : index
    %1 = vector.load %arg2[%c0_1, %c0_2, %c0_3] : memref<1x16x64xf32, #tpu.memory_space<vmem>>, vector<1x16x64xf32>
    %2 = vector.shape_cast %1 : vector<1x16x64xf32> to vector<16x64xf32>
    %cst = arith.constant dense<0.000000e+00> : vector<8x64xf32>
    %3 = tpu.matmul %0, %2, %cst {dimension_numbers = #tpu.dot_dimension_numbers<[1], [0], [0], [1], [0, 0, 1, 1], [], []>} : vector<8x16xf32>, vector<16x64xf32>, vector<8x64xf32> -> vector<8x64xf32>
    %c0_4 = arith.constant 0 : index
    %c0_5 = arith.constant 0 : index
    %4 = vector.load %arg4[%c0_4, %c0_5] : memref<8x1xf32, #tpu.memory_space<vmem>>, vector<8x1xf32>
    %5 = vector.broadcast %4 : vector<8x1xf32> to vector<8x64xf32>
    %6 = arith.addf %3, %5 : vector<8x64xf32>
    %cst_6 = arith.constant 0.000000e+00 : f32
    %7 = vector.broadcast %cst_6 : f32 to vector<8x64xf32>
    %8 = arith.maximumf %6, %7 : vector<8x64xf32>
    %c0_7 = arith.constant 0 : index
    %c0_8 = arith.constant 0 : index
    %c0_9 = arith.constant 0 : index
    %9 = vector.load %arg5[%c0_7, %c0_8, %c0_9] : memref<1x8x64xf32, #tpu.memory_space<vmem>>, vector<1x8x64xf32>
    %10 = vector.shape_cast %9 : vector<1x8x64xf32> to vector<8x64xf32>
    %11 = vector.shape_cast %8 : vector<8x64xf32> to vector<1x8x64xf32>
    tpu.vector_store %arg5[%c0_7, %c0_8, %c0_9], %11 {strides = array<i32>} : memref<1x8x64xf32, #tpu.memory_space<vmem>>, vector<1x8x64xf32>,
    return
  }
  func.func @transform_0(%arg0: i32, %arg1: i32) -> (i32, i32, i32) {
    %c0_i32 = arith.constant 0 : i32
    %c0_i32_0 = arith.constant 0 : i32
    return %arg0, %c0_i32, %arg1 : i32, i32, i32
  }
  func.func @transform_1(%arg0: i32, %arg1: i32) -> (i32, i32) {
    %c0_i32 = arith.constant 0 : i32
    %c0_i32_0 = arith.constant 0 : i32
    %c0_i32_1 = arith.constant 0 : i32
    return %c0_i32, %c0_i32_0 : i32, i32
  }
  func.func @transform_2(%arg0: i32, %arg1: i32) -> (i32, i32) {
    %c0_i32 = arith.constant 0 : i32
    %c0_i32_0 = arith.constant 0 : i32
    %c0_i32_1 = arith.constant 0 : i32
    return %c0_i32, %c0_i32_0 : i32, i32
  }
  func.func @transform_3(%arg0: i32, %arg1: i32) -> (i32, i32, i32) {
    %c0_i32 = arith.constant 0 : i32
    %c0_i32_0 = arith.constant 0 : i32
    return %arg0, %c0_i32, %arg1 : i32, i32, i32
  }
}

</mosaic_0001>

<bundles_post_ra>
// kernel: down_wt_forward.1
= control target key start
LH: loop header
LB: loop body
LE: loop exit
PB: predicated region body
PF: predicated region fallthrough
CT: control target
= control target key end

     0   :  { %s465_s12 = smov 0   ;;  %s467_s13 = smov 0   ;;  %s504_s0 = inlined_call_operand.vmem [shape: f32[2,16,64], index: 0, kind: input, shape index: {}]   ;;  %s505_s1 = inlined_call_operand.vmem [shape: f32[8,16], index: 1, kind: input, shape index: {}]   ;;  %s506_s2 = inlined_call_operand.vmem [shape: f32[8,1], index: 2, kind: input, shape index: {}]   ;;  %s507_s3 = inlined_call_operand.vmem [shape: f32[2,8,64], index: 3, kind: output, shape index: {}]  }
   0x1   :  { %s469_s14 = smov 0  }
   0x2 LB: > { %s25_s15 = sadd.s32 1, %s435_s13  ;;  %p367_p0 = scmp.ge.s32.totalorder %s439_s14, 1  ;;  %s439_s14 = sphi %s469_s14, %s13_s14   ;;  %s435_s13 = sphi %s467_s13, %s509_s13   ;;  %s431_s12 = sphi %s465_s12, %s508_s12  }
   0x3   : > { %p27_p1 = scmp.ge.s32.totalorder %s25_s15, 2  ;;  %p156_p2 = scmp.lt.s32.totalorder %s439_s14, 3 }
   0x5   : > { %s511_s15 = smov (%p27_p1, %s25_s15), 0  ;;  %p157_p3 = pnand %p367_p0, %p156_p2 }
   0x6   : > { %p185_p4 = scmp.lt.s32.totalorder (!%p157_p3), %s431_s12, 1  ;;  %v441_v0 = vmov (!%p157_p3), 0.0|0.0   ;;  %vm442_vm0 = vmmov (!%p157_p3), 0   ;;  %v443_v1 = vmov (!%p157_p3), 0.0   ;;  %v203_v2 = vld [vmem:[%s506_s2] sm:$0xff] (!%p157_p3)  ;;  %v444_v3 = vmov (!%p157_p3), 0  }
   0x7   : > { %160 = sbr.rel (%p157_p3) target bundleno = 240 (0xf0), region = 32  ;;  %385 = vmatprep.subr.bf16.mxu0 (!%p157_p3), %v441_v0  ;;  %382 = vmatprep.mubr.msk.f32.mxu0 (!%p157_p3), %vm442_vm0, %v443_v1  ;;  %v200_v7 = vld [vmem:[%s505_s1] sm:$0xff] (!%p157_p3)  ;;  %vm209_vm1 = vcmask (!%p157_p3), 130048   ;;  %vm284_vm2 = vcmask (!%p157_p3), 523264  }
   0x8   : > { %416 = vset.pattern.permute.xlu0 (!%p157_p3), %v444_v3 }
   0x9   : > { %206 = vperm.xlu0 (!%p157_p3), %416, %v203_v2  }
   0xe   : > { %s513_s12 = smov (!%p185_p4, %s431_s12), 1 }
   0xf   : > { %s374_s18 = sshll.u32 %s513_s12, 4  ;;  %s370_s24 = sshll.u32 %s513_s12, 3 }
  0x10   : > { %s192_s21 = scalar_lea.vmem %s504_s0, %s374_s18  ;;  %s199_s27 = scalar_lea.vmem %s507_s3, %s370_s24 }
  0x11   : > { %v201_v4 = vld [vmem:[%s192_s21] sm:$0xff]  ;;  %v202_v5 = vld [vmem:[%s192_s21 + $0x8] sm:$0xff] }
  0x12   : > { %v386_v6 = vpack.c.bf16 %v202_v5, %v201_v4 }
  0x14   : > { %387 = vmatpush3.bf16.msra.mxu0 %v386_v6 }
  0x17   : > { %383 = vmatmul.mubr.msk.f32.vlgmr.msra.gmra.mrb[0].mxu0 %vm209_vm1, %v200_v7 }
  0x88   : > { %v207_v8 = vpop.permute.xlu0 %206 }
  0xea   : > { %v279_v9 = vpop.f32.mrb[0].mxu0 }
  0xeb   : > { %v280_v10 = vadd.f32 %v279_v9, %v207_v8  ;;  %v384_v11 = vpop.f32.mrb[1].mxu0 }
  0xed   : > { %v283_v12 = vmax.f32 %v280_v10, 0.0 }
  0xef   : > { %285 = vst.msk [vmem:[%s199_s27] sm:$0xff] %vm284_vm2, %v283_v12 }
  0xf0 PF: > { %s13_s14 = sadd.s32 1, %s439_s14   ;;  %s508_s12 = smov %s435_s13 }
  0xf1   : > { %p10_p5 = scmp.ge.s32.totalorder %s13_s14, 4   ;;  %s509_s13 = smov %s511_s15 }
  0xf3   :  { %12 = sbr.rel (!%p10_p5) target bundleno = 2 (0x2), region = 62 }

</bundles_post_ra>
